<compile_context>
chip_gen: v7x
topology: tpu7x:2x2x1
jax: 0.10.0
libtpu: 0.0.40
codegen_flags: <defaults>
</compile_context>

<pallas_src>
import jax
import jax.numpy as jnp
from jax.experimental import pallas as pl
from jax.experimental.pallas import tpu as pltpu

# ---------------------------------------------------------------------------
# Problem sizes (small, consistent with in_chans=2)
# ---------------------------------------------------------------------------
B = 2                # batch
CIN = 2              # in_chans=2 (as in the module)
H = W = 16           # spatial
HW = H * W
NFEAT = 32           # n_features of the synthetic backbone
KH = KW = 3          # conv stem kernel
K = KH * KW * CIN    # im2col contraction dim = 18
KPAD = 24            # padded contraction dim (multiple of 8)
BIAS_COL = K         # column 18 of the packed weights = conv bias (ones row)
FC_COL = K + 1       # column 19 of the packed weights = fc weight (zeros row)
OUT_ROWS = 8         # padded output rows (one full vreg sublane extent)
OUT_LANES = 128      # padded output lanes (one full vreg lane extent)


# ---------------------------------------------------------------------------
# Fused kernel (single invocation, no grid):
#   conv-as-matmul (+ folded bias) -> ReLU -> per-batch GAP lane reduce ->
#   fc multiply + sublane reduce -> one dense (8,128) store.
# ---------------------------------------------------------------------------
def backbone_head_kernel(colsT_ref, wpack_ref, fcb_ref, o_ref):
    # colsT_ref: (KPAD, B*H*W) VMEM  im2col patches (rows 0..17), ones row (18),
    #                                zero rows (19..23); spatial lane-dense.
    # wpack_ref: (NFEAT, KPAD) VMEM  conv weights (cols 0..17), conv bias (18),
    #                                fc weight (19), zero cols (20..23).
    # fcb_ref:   (1, 1)       SMEM   fc bias scalar.
    # o_ref:     (8, 128)     VMEM   padded output; logit of batch b at [b, 0].
    wpack = wpack_ref[...]                                       # (NFEAT, KPAD)

    # Conv + bias in one MXU pass (ones row x bias column adds the bias;
    # the fc-weight column meets an all-zero row, contributing nothing).
    feats = jnp.dot(wpack, colsT_ref[...],
                    preferred_element_type=jnp.float32)          # (NFEAT, B*HW)
    feats = jnp.maximum(feats, 0.0)                              # ReLU

    fcw_col = wpack[:, FC_COL:FC_COL + 1]                        # (NFEAT, 1)
    inv_hw = jnp.float32(1.0 / HW)
    fcb = fcb_ref[0, 0]                                          # SMEM scalar

    # GAP first (lane reduce per batch half), then the tiny fc contraction.
    row_ids = jax.lax.broadcasted_iota(jnp.int32, (OUT_ROWS, OUT_LANES), 0)
    out = jnp.zeros((OUT_ROWS, OUT_LANES), jnp.float32)
    for b in range(B):                                           # static slices
        gsum = jnp.sum(feats[:, b * HW:(b + 1) * HW],
                       axis=1, keepdims=True)                    # (NFEAT, 1)
        val = jnp.sum(gsum * fcw_col, axis=0,
                      keepdims=True) * inv_hw + fcb              # (1, 1)
        out = jnp.where(row_ids == b, val, out)
    o_ref[...] = out                                             # one dense store


def model_forward(x_nchw, conv_w, conv_b, fc_w, fc_b):
    """x_nchw: (B, CIN, H, W) float32 -> (B, 1) float32."""
    b, c, h, w = x_nchw.shape
    assert (b, c, h, w) == (B, CIN, H, W)

    # NCHW -> NHWC, pad by 1, im2col built directly in lane-major (K, B*H*W)
    # order so the long (spatial) axis is lane-dense inside the kernel.
    x = jnp.transpose(x_nchw, (0, 2, 3, 1))                      # (B,H,W,CIN)
    xp = jnp.pad(x, ((0, 0), (1, 1), (1, 1), (0, 0)))
    patches = [xp[:, i:i + H, j:j + W, :] for i in range(KH) for j in range(KW)]
    stacked = jnp.stack(patches, axis=0)                         # (P,B,H,W,CIN)
    colsT = jnp.transpose(stacked, (0, 4, 1, 2, 3)).reshape(K, B * HW)
    colsT = jnp.concatenate(
        [colsT.astype(jnp.float32),
         jnp.ones((1, B * HW), jnp.float32),                     # bias row
         jnp.zeros((KPAD - K - 1, B * HW), jnp.float32)],        # pad rows
        axis=0)                                                  # (KPAD, B*HW)

    # Packed weights: conv im2col weights | conv bias | fc weight | zero pad.
    wc = jnp.transpose(conv_w, (0, 2, 3, 1)).reshape(NFEAT, K).astype(jnp.float32)
    wpack = jnp.concatenate(
        [wc,
         conv_b.reshape(NFEAT, 1).astype(jnp.float32),           # col BIAS_COL
         fc_w.reshape(1, NFEAT).T.astype(jnp.float32),           # col FC_COL
         jnp.zeros((NFEAT, KPAD - K - 2), jnp.float32)],
        axis=1)                                                  # (NFEAT, KPAD)

    fcb = fc_b.reshape(1, 1).astype(jnp.float32)

    out_pad = pl.pallas_call(
        backbone_head_kernel,
        out_shape=jax.ShapeDtypeStruct((OUT_ROWS, OUT_LANES), jnp.float32),
        in_specs=[
            pl.BlockSpec(memory_space=pltpu.MemorySpace.VMEM),   # colsT
            pl.BlockSpec(memory_space=pltpu.MemorySpace.VMEM),   # wpack
            pl.BlockSpec(memory_space=pltpu.MemorySpace.SMEM),   # fcb scalar
        ],
        out_specs=pl.BlockSpec(memory_space=pltpu.MemorySpace.VMEM),
    )(colsT, wpack, fcb)

    return out_pad[:B, :1]                                       # (B, 1)


def model_forward_ref(x_nchw, conv_w, conv_b, fc_w, fc_b):
    """Pure-JAX reference of the same synthetic backbone + head."""
    x = jnp.transpose(x_nchw, (0, 2, 3, 1))
    xp = jnp.pad(x, ((0, 0), (1, 1), (1, 1), (0, 0)))
    patches = [xp[:, i:i + H, j:j + W, :] for i in range(KH) for j in range(KW)]
    cols = jnp.concatenate(patches, axis=-1).reshape(B, HW, K)
    wc = jnp.transpose(conv_w, (2, 3, 1, 0)).reshape(K, NFEAT)
    feats = jnp.maximum(jnp.einsum('bpk,kn->bpn', cols, wc) + conv_b, 0.0)
    gap = feats.mean(axis=1)                                     # (B, NFEAT)
    return gap @ fc_w.T + fc_b                                   # (B, 1)


if __name__ == "__main__":
    key = jax.random.PRNGKey(0)
    kx, kw1, kb1, kw2, kb2 = jax.random.split(key, 5)

    x = jax.random.normal(kx, (B, CIN, H, W), dtype=jnp.float32)
    conv_w = jax.random.normal(kw1, (NFEAT, CIN, KH, KW), dtype=jnp.float32) * 0.1
    conv_b = jax.random.normal(kb1, (NFEAT,), dtype=jnp.float32) * 0.1
    fc_w = jax.random.normal(kw2, (1, NFEAT), dtype=jnp.float32) * 0.1
    fc_b = jax.random.normal(kb2, (1,), dtype=jnp.float32) * 0.1

    fwd = jax.jit(model_forward)        # fuse the im2col preprocessing in XLA
    out = jax.block_until_ready(fwd(x, conv_w, conv_b, fc_w, fc_b))

    ref = model_forward_ref(x, conv_w, conv_b, fc_w, fc_b)
    assert out.shape == (B, 1)
    assert jnp.allclose(out, ref, atol=1e-4, rtol=1e-4), (out, ref)
    print("KERNEL_OK")
</pallas_src>

<mosaic_0001>
module attributes {stable_mosaic.version = 11 : i64} {
  func.func @backbone_head_kernel(%arg0: memref<24x512xf32, #tpu.memory_space<vmem>>, %arg1: memref<32x24xf32, #tpu.memory_space<vmem>>, %arg2: memref<1x1xf32, #tpu.memory_space<smem>>, %arg3: memref<8x128xf32, #tpu.memory_space<vmem>>) attributes {dimension_semantics = [], scalar_prefetch = 0 : i64, scratch_operands = 0 : i64, tpu.core_type = #tpu.core_type<tc>} {
    %c0 = arith.constant 0 : index
    %c0_0 = arith.constant 0 : index
    %0 = vector.load %arg1[%c0, %c0_0] : memref<32x24xf32, #tpu.memory_space<vmem>>, vector<32x24xf32>
    %c0_1 = arith.constant 0 : index
    %c0_2 = arith.constant 0 : index
    %1 = vector.load %arg0[%c0_1, %c0_2] : memref<24x512xf32, #tpu.memory_space<vmem>>, vector<24x512xf32>
    %cst = arith.constant dense<0.000000e+00> : vector<32x512xf32>
    %2 = tpu.matmul %0, %1, %cst {dimension_numbers = #tpu.dot_dimension_numbers<[1], [0], [0], [1], [0, 0, 1, 1], [], []>} : vector<32x24xf32>, vector<24x512xf32>, vector<32x512xf32> -> vector<32x512xf32>
    %cst_3 = arith.constant 0.000000e+00 : f32
    %3 = vector.broadcast %cst_3 : f32 to vector<32x512xf32>
    %4 = arith.maximumf %2, %3 : vector<32x512xf32>
    %5 = vector.extract_strided_slice %0 {offsets = [0, 19], sizes = [32, 1], strides = [1, 1]} : vector<32x24xf32> to vector<32x1xf32>
    %c0_4 = arith.constant 0 : index
    %c0_5 = arith.constant 0 : index
    %6 = memref.load %arg2[%c0_4, %c0_5] : memref<1x1xf32, #tpu.memory_space<smem>>
    %7 = tpu.iota {dimensions = array<i32: 0>} : vector<8x128xi32>
    %cst_6 = arith.constant 0.000000e+00 : f32
    %8 = vector.broadcast %cst_6 : f32 to vector<8x128xf32>
    %9 = vector.extract_strided_slice %4 {offsets = [0, 0], sizes = [32, 256], strides = [1, 1]} : vector<32x512xf32> to vector<32x256xf32>
    %cst_7 = arith.constant dense<0.000000e+00> : vector<32xf32>
    %10 = vector.multi_reduction <add>, %9, %cst_7 [1] : vector<32x256xf32> to vector<32xf32>
    %11 = vector.shape_cast %10 : vector<32xf32> to vector<32x1xf32>
    %12 = arith.mulf %11, %5 : vector<32x1xf32>
    %cst_8 = arith.constant dense<0.000000e+00> : vector<1xf32>
    %13 = vector.multi_reduction <add>, %12, %cst_8 [0] : vector<32x1xf32> to vector<1xf32>
    %14 = vector.shape_cast %13 : vector<1xf32> to vector<1x1xf32>
    %cst_9 = arith.constant 3.906250e-03 : f32
    %15 = vector.broadcast %cst_9 : f32 to vector<1x1xf32>
    %16 = arith.mulf %14, %15 : vector<1x1xf32>
    %17 = vector.broadcast %6 : f32 to vector<1x1xf32>
    %18 = arith.addf %16, %17 : vector<1x1xf32>
    %c0_i32 = arith.constant 0 : i32
    %19 = vector.broadcast %c0_i32 : i32 to vector<8x128xi32>
    %20 = arith.cmpi eq, %7, %19 : vector<8x128xi32>
    %21 = vector.shape_cast %18 : vector<1x1xf32> to vector<1x1xf32>
    %22 = vector.broadcast %21 : vector<1x1xf32> to vector<8x128xf32>
    %23 = arith.select %20, %22, %8 : vector<8x128xi1>, vector<8x128xf32>
    %24 = vector.extract_strided_slice %4 {offsets = [0, 256], sizes = [32, 256], strides = [1, 1]} : vector<32x512xf32> to vector<32x256xf32>
    %cst_10 = arith.constant dense<0.000000e+00> : vector<32xf32>
    %25 = vector.multi_reduction <add>, %24, %cst_10 [1] : vector<32x256xf32> to vector<32xf32>
    %26 = vector.shape_cast %25 : vector<32xf32> to vector<32x1xf32>
    %27 = arith.mulf %26, %5 : vector<32x1xf32>
    %cst_11 = arith.constant dense<0.000000e+00> : vector<1xf32>
    %28 = vector.multi_reduction <add>, %27, %cst_11 [0] : vector<32x1xf32> to vector<1xf32>
    %29 = vector.shape_cast %28 : vector<1xf32> to vector<1x1xf32>
    %cst_12 = arith.constant 3.906250e-03 : f32
    %30 = vector.broadcast %cst_12 : f32 to vector<1x1xf32>
    %31 = arith.mulf %29, %30 : vector<1x1xf32>
    %32 = vector.broadcast %6 : f32 to vector<1x1xf32>
    %33 = arith.addf %31, %32 : vector<1x1xf32>
    %c1_i32 = arith.constant 1 : i32
    %34 = vector.broadcast %c1_i32 : i32 to vector<8x128xi32>
    %35 = arith.cmpi eq, %7, %34 : vector<8x128xi32>
    %36 = vector.shape_cast %33 : vector<1x1xf32> to vector<1x1xf32>
    %37 = vector.broadcast %36 : vector<1x1xf32> to vector<8x128xf32>
    %38 = arith.select %35, %37, %23 : vector<8x128xi1>, vector<8x128xf32>
    %c0_13 = arith.constant 0 : index
    %c0_14 = arith.constant 0 : index
    %39 = vector.load %arg3[%c0_13, %c0_14] : memref<8x128xf32, #tpu.memory_space<vmem>>, vector<8x128xf32>
    tpu.vector_store %arg3[%c0_13, %c0_14], %38 {strides = array<i32>} : memref<8x128xf32, #tpu.memory_space<vmem>>, vector<8x128xf32>,
    return
  }
}

</mosaic_0001>

<bundles_post_ra>
// kernel: model_forward.1
= control target key start
LH: loop header
LB: loop body
LE: loop exit
PB: predicated region body
PF: predicated region fallthrough
CT: control target
= control target key end

     0   :  { %v344_v3 = vmov 0.0   ;;  %vm31_vm0 = vcmask 195584   ;;  %v345_v61 = vmov 19   ;;  %vm257_vm1 = vcmask 162968   ;;  %s460_s0 = inlined_call_operand.vmem [shape: f32[24,512], index: 0, kind: input, shape index: {}]   ;;  %s461_s1 = inlined_call_operand.vmem [shape: f32[32,24], index: 1, kind: input, shape index: {}]   ;;  %s462_s2 = inlined_call_operand.<no memory space> [shape: f32[1,1], index: 2, kind: input, shape index: {}]   ;;  %s463_s3 = inlined_call_operand.vmem [shape: f32[8,128], index: 3, kind: output, shape index: {}]  }
   0x1   :  { %v20_v0 = vld [vmem:[%s460_s0 + $0x8] sm:$0xff]  ;;  %v22_v2 = vld [vmem:[%s460_s0 + $0x18] sm:$0xff]  ;;  %108 = vmatprep.mubr.f32.mxu0 %v344_v3  ;;  %197 = vmatprep.mubr.f32.mxu1 %v344_v3  ;;  %v19_v6 = vld [vmem:[%s460_s0] sm:$0xff] }
   0x2   :  { %v24_v1 = vld [vmem:[%s460_s0 + $0x28] sm:$0xff]  ;;  %v26_v5 = vld [vmem:[%s460_s0 + $0x38] sm:$0xff]  ;;  %v23_v7 = vld [vmem:[%s460_s0 + $0x20] sm:$0xff]  ;;  %343 = vset.pattern.permute.xlu1 %v345_v61  ;;  %342 = vset.pattern.permute.xlu0 %v345_v61 }
   0x3   :  { %v332_v4 = vpack.c.bf16 %v24_v1, %v20_v0  ;;  %v336_v8 = vpack.c.bf16 %v26_v5, %v22_v2  ;;  %v334_v9 = vpack.c.bf16 %v23_v7, %v19_v6  ;;  %v21_v10 = vld [vmem:[%s460_s0 + $0x10] sm:$0xff]  ;;  %v28_v12 = vld [vmem:[%s460_s0 + $0x48] sm:$0xff]  ;;  %v30_v14 = vld [vmem:[%s460_s0 + $0x58] sm:$0xff] }
   0x4   :  { %v25_v11 = vld [vmem:[%s460_s0 + $0x30] sm:$0xff]  ;;  %v27_v15 = vld [vmem:[%s460_s0 + $0x40] sm:$0xff]  ;;  %v414_v18 = vld [vmem:[%s461_s1 + $0x8] sm:$0xff] }
   0x5   :  { %333 = vmatprep.subr.bf16.mxu0 %v332_v4  ;;  %v338_v13 = vpack.c.bf16 %v25_v11, %v21_v10  ;;  %337 = vmatprep.subr.bf16.mxu1 %v336_v8  ;;  %v29_v16 = vld [vmem:[%s460_s0 + $0x50] sm:$0xff]  ;;  %v405_v17 = vld [vmem:[%s461_s1] sm:$0xff]  ;;  %v432_v20 = vld [vmem:[%s461_s1 + $0x18] sm:$0xff] }
   0x6   :  { %335 = vmatpush1.bf16.msra.mxu0 %v334_v9  ;;  %v423_v19 = vld [vmem:[%s461_s1 + $0x10] sm:$0xff] }
   0x7   :  { %339 = vmatpush1.bf16.msra.mxu1 %v338_v13  ;;  %48 = vmatprep.subr.mxu0 %v28_v12 }
   0x8   :  { %137 = vmatprep.subr.mxu1 %v30_v14 }
   0xa   :  { %49 = vmatpush1.msra.mxu0 %v27_v15 }
   0xb   :  { %138 = vmatpush1.msra.mxu1 %v29_v16  ;;  %324 = vmatmul.mubr.msk.f32.vlgmr.msra.gmra.mrb[0].mxu0 %vm31_vm0, %v405_v17 }
   0xc   :  { %328 = vmatmul.mubr.msk.f32.vlgmr.msra.gmra.mrb[0].mxu1 %vm31_vm0, %v405_v17  ;;  %114 = vmatprep.mubr.f32.mxu0 %v344_v3 }
   0xd   :  { %203 = vmatprep.mubr.f32.mxu1 %v344_v3 }
   0xf   :  { %325 = vmatmul.mubr.msk.f32.gmra.mrb[2].mxu0 %vm31_vm0, %v414_v18 }
  0x10   :  { %329 = vmatmul.mubr.msk.f32.gmra.mrb[2].mxu1 %vm31_vm0, %v414_v18  ;;  %120 = vmatprep.mubr.f32.mxu0 %v344_v3 }
  0x11   :  { %209 = vmatprep.mubr.f32.mxu1 %v344_v3 }
  0x13   :  { %326 = vmatmul.mubr.msk.f32.gmra.mrb[4].mxu0 %vm31_vm0, %v423_v19 }
  0x14   :  { %330 = vmatmul.mubr.msk.f32.gmra.mrb[4].mxu1 %vm31_vm0, %v423_v19  ;;  %126 = vmatprep.mubr.f32.mxu0 %v344_v3 }
  0x15   :  { %215 = vmatprep.mubr.f32.mxu1 %v344_v3 }
  0x17   :  { %327 = vmatmul.mubr.msk.f32.gmra.mrb[6].mxu0 %vm31_vm0, %v432_v20 }
  0x18   :  { %331 = vmatmul.mubr.msk.f32.gmra.mrb[6].mxu1 %vm31_vm0, %v432_v20 }
  0xde   :  { %v110_v21 = vpop.f32.mrb[0].mxu0 }
  0xdf   :  { %v222_v22 = vmax.f32 %v110_v21, 0.0  ;;  %v199_v23 = vpop.f32.mrb[0].mxu1  ;;  %v112_v24 = vpop.f32.mrb[1].mxu0 }
  0xe0   :  { %v224_v25 = vmax.f32 %v199_v23, 0.0  ;;  %v223_v26 = vmax.f32 %v112_v24, 0.0  ;;  %v201_v27 = vpop.f32.mrb[1].mxu1 }
  0xe1   :  { %v225_v28 = vmax.f32 %v201_v27, 0.0 }
  0xe2   :  { %v116_v29 = vpop.f32.mrb[2].mxu0  ;;  %v241_v30 = vadd.f32 %v223_v26, %v222_v22 }
  0xe3   :  { %v226_v31 = vmax.f32 %v116_v29, 0.0  ;;  %v205_v32 = vpop.f32.mrb[2].mxu1  ;;  %v118_v33 = vpop.f32.mrb[3].mxu0  ;;  %v281_v34 = vadd.f32 %v225_v28, %v224_v25 }
  0xe4   :  { %v228_v35 = vmax.f32 %v205_v32, 0.0  ;;  %v227_v36 = vmax.f32 %v118_v33, 0.0  ;;  %v207_v37 = vpop.f32.mrb[3].mxu1  ;;  %242 = vadd.xlane.f32.xlu0 %v241_v30 }
  0xe5   :  { %v229_v38 = vmax.f32 %v207_v37, 0.0  ;;  %282 = vadd.xlane.f32.xlu1 %v281_v34 }
  0xe6   :  { %v122_v39 = vpop.f32.mrb[4].mxu0  ;;  %v244_v40 = vadd.f32 %v227_v36, %v226_v31 }
  0xe7   :  { %v230_v41 = vmax.f32 %v122_v39, 0.0  ;;  %v211_v42 = vpop.f32.mrb[4].mxu1  ;;  %v124_v43 = vpop.f32.mrb[5].mxu0  ;;  %v284_v44 = vadd.f32 %v229_v38, %v228_v35 }
  0xe8   :  { %v232_v45 = vmax.f32 %v211_v42, 0.0  ;;  %v231_v46 = vmax.f32 %v124_v43, 0.0  ;;  %v213_v47 = vpop.f32.mrb[5].mxu1  ;;  %245 = vadd.xlane.f32.xlu0 %v244_v40 }
  0xe9   :  { %v233_v48 = vmax.f32 %v213_v47, 0.0  ;;  %285 = vadd.xlane.f32.xlu1 %v284_v44 }
  0xea   :  { %v128_v49 = vpop.f32.mrb[6].mxu0  ;;  %v247_v50 = vadd.f32 %v231_v46, %v230_v41 }
  0xeb   :  { %v234_v51 = vmax.f32 %v128_v49, 0.0  ;;  %v217_v52 = vpop.f32.mrb[6].mxu1  ;;  %v130_v53 = vpop.f32.mrb[7].mxu0  ;;  %v287_v54 = vadd.f32 %v233_v48, %v232_v45  ;;  %v239_v45 = vlaneseq }
  0xec   :  { %v236_v55 = vmax.f32 %v217_v52, 0.0  ;;  %v235_v56 = vmax.f32 %v130_v53, 0.0  ;;  %v219_v57 = vpop.f32.mrb[7].mxu1  ;;  %248 = vadd.xlane.f32.xlu0 %v247_v50 }
  0xed   :  { %v237_v58 = vmax.f32 %v219_v57, 0.0  ;;  %288 = vadd.xlane.f32.xlu1 %v287_v54  ;;  %v240_v46 = vshrl.u32 %v239_v45, 7 }
  0xee   :  { %v250_v59 = vadd.f32 %v235_v56, %v234_v51 }
  0xef   :  { %v290_v60 = vadd.f32 %v237_v58, %v236_v55  ;;  %vm274_vm2 = vcmp.eq.s32.totalorder %v240_v46, 0  ;;  %vm312_vm3 = vcmp.eq.s32.totalorder %v240_v46, 1 }
  0xf0   :  { %251 = vadd.xlane.f32.xlu0 %v250_v59 }
  0xf1   :  { %291 = vadd.xlane.f32.xlu1 %v290_v60 }
 0x171   :  { %v243_v62 = vpop.xlane.xlu0 %242 }
 0x172   :  { %v283_v63 = vpop.xlane.xlu1 %282  ;;  %v253_v4 = vmul.f32 %v243_v62, %v405_v17 }
 0x173   :  { %v293_v5 = vmul.f32 %v283_v63, %v405_v17 }
 0x174   :  { %v258_v12 = vsel %vm257_vm1, %v253_v4, 0.0 }
 0x175   :  { %v246_v0 = vpop.xlane.xlu0 %245  ;;  %v297_v14 = vsel %vm257_vm1, %v293_v5, 0.0 }
 0x176   :  { %v286_v1 = vpop.xlane.xlu1 %285  ;;  %v254_v2 = vmul.f32 %v246_v0, %v414_v18 }
 0x177   :  { %v294_v3 = vmul.f32 %v286_v1, %v414_v18 }
 0x178   :  { %v259_v7 = vsel %vm257_vm1, %v254_v2, 0.0 }
 0x179   :  { %v249_v6 = vpop.xlane.xlu0 %248  ;;  %v298_v10 = vsel %vm257_vm1, %v294_v3, 0.0  ;;  %v260_v15 = vadd.f32 %v259_v7, %v258_v12 }
 0x17a   :  { %v289_v8 = vpop.xlane.xlu1 %288  ;;  %v255_v9 = vmul.f32 %v249_v6, %v423_v19  ;;  %v299_v18 = vadd.f32 %v298_v10, %v297_v14 }
 0x17b   :  { %v295_v11 = vmul.f32 %v289_v8, %v423_v19 }
 0x17c   :  { %v261_v13 = vsel %vm257_vm1, %v255_v9, 0.0 }
 0x17d   :  { %v300_v16 = vsel %vm257_vm1, %v295_v11, 0.0  ;;  %v252_v17 = vpop.xlane.xlu0 %251  ;;  %v262_v23 = vadd.f32 %v261_v13, %v260_v15 }
 0x17e   :  { %v292_v21 = vpop.xlane.xlu1 %291  ;;  %v256_v22 = vmul.f32 %v252_v17, %v432_v20  ;;  %v301_v25 = vadd.f32 %v300_v16, %v299_v18 }
 0x17f   :  { %v296_v24 = vmul.f32 %v292_v21, %v432_v20  ;;  %v272_v20 = vstv %s462_s2 }
 0x180   :  { %v263_v19 = vsel %vm257_vm1, %v256_v22, 0.0 }
 0x181   :  { %v302_v26 = vsel %vm257_vm1, %v296_v24, 0.0  ;;  %v264_v27 = vadd.f32 %v263_v19, %v262_v23 }
 0x182   :  { %v303_v28 = vadd.f32 %v302_v26, %v301_v25 }
 0x183   :  { %v265_v29 = vrot.slane %v264_v27, 4 }
 0x184   :  { %v304_v30 = vrot.slane %v303_v28, 4 }
 0x185   :  { %v266_v31 = vadd.f32 %v265_v29, %v264_v27 }
 0x186   :  { %v305_v32 = vadd.f32 %v304_v30, %v303_v28 }
 0x187   :  { %v267_v33 = vrot.slane %v266_v31, 2 }
 0x188   :  { %v306_v34 = vrot.slane %v305_v32, 2 }
 0x189   :  { %v268_v35 = vadd.f32 %v267_v33, %v266_v31 }
 0x18a   :  { %v307_v36 = vadd.f32 %v306_v34, %v305_v32 }
 0x18b   :  { %v269_v37 = vrot.slane %v268_v35, 1 }
 0x18c   :  { %v308_v38 = vrot.slane %v307_v36, 1 }
 0x18d   :  { %v270_v39 = vadd.f32 %v269_v37, %v268_v35 }
 0x18e   :  { %v309_v40 = vadd.f32 %v308_v38, %v307_v36 }
 0x18f   :  { %v271_v41 = vmul.f32 0.00390625, %v270_v39 }
 0x190   :  { %v310_v42 = vmul.f32 0.00390625, %v309_v40 }
 0x191   :  { %v273_v43 = vadd.f32 %v272_v20, %v271_v41 }
 0x192   :  { %v311_v44 = vadd.f32 %v310_v42, %v272_v20 }
 0x193   :  { %277 = vperm.xlu0 %342, %v273_v43  }
 0x194   :  { %315 = vperm.xlu1 %343, %v311_v44  }
 0x212   :  { %v278_v47 = vpop.permute.xlu0 %277 }
 0x213   :  { %v316_v48 = vpop.permute.xlu1 %315  ;;  %v280_v49 = vsel %vm274_vm2, %v278_v47, 0.0 }
 0x214   :  { %v318_v50 = vsel %vm312_vm3, %v316_v48, %v280_v49 }
 0x215   :  { %319 = vst [vmem:[%s463_s3] sm:$0xff] %v318_v50 }

</bundles_post_ra>
